<compile_context>
chip_gen: v7x
topology: tpu7x:2x2x1
jax: 0.10.0
libtpu: 0.0.40
codegen_flags: <defaults>
</compile_context>

<pallas_src>
import jax
import jax.numpy as jnp
from jax.experimental import pallas as pl
from jax.experimental.pallas import tpu as pltpu

HIDDEN = 256


def critic_kernel(s_ref, a_ref, w1_ref, b1_ref, w2_ref, b2_ref,
                  w3_ref, b3_ref, o_ref):
    # ---- layer 1: in-kernel concat (cheap 8+8 lane copy) + single K=d_in dot.
    x = jnp.concatenate([s_ref[...], a_ref[...]], axis=-1).astype(jnp.bfloat16)
    h1 = jnp.dot(x, w1_ref[...], preferred_element_type=jnp.float32)
    # Bias + ReLU in f32, then drop to bf16 immediately so only the bf16 copy
    # stays live into layer 2 (avoids a (tile_b, 256) f32 live range / spills).
    h1 = jnp.maximum(h1 + b1_ref[...], 0.0).astype(jnp.bfloat16)

    # ---- layer 2 (bf16 operands, f32 accumulate on the MXU).
    h2 = jnp.dot(h1, w2_ref[...], preferred_element_type=jnp.float32)
    h2 = jnp.maximum(h2 + b2_ref[...], 0.0)

    # ---- layer 3 as a lane reduction (VPU/XLU), not a (256,1) MXU matmul.
    q = jnp.sum(h2 * w3_ref[...], axis=-1) + b3_ref[0]      # (tile_b,)
    # Lane-dense store: output block is (1, tile_b).
    o_ref[0, :] = q.astype(o_ref.dtype)


def _tile_cap():
    """Generation-aware batch-tile cap (safe fallback if HW query fails)."""
    try:
        name = str(getattr(pltpu.get_tpu_info(), "chip_version", "")).lower()
        if "v5" in name:
            return 512   # single vst slot: keep f32 activation spills small
    except Exception:
        pass
    return 1024          # v6e/v7x: amortize ~0.35us/step grid overhead


def _choose_tile_b(B, cap):
    if B <= 256:
        return B         # single full-array block (block shape == array shape)
    # tile_b must be a multiple of 128 (lane-dense output block, sublane-aligned
    # inputs); aim for >= 2 grid steps so both v7x TensorCores get work.
    half = 128 * pl.cdiv(B, 2 * 128)
    return int(min(half, cap))


def critic_forward(state, action, kernel_params):
    """Pallas-backed equivalent of CriticNetwork.forward(state, action)."""
    w1, b1, w2, b2, w3_row, b3 = kernel_params
    B, state_dim = state.shape
    action_dim = action.shape[1]
    d_in = state_dim + action_dim

    tile_b = _choose_tile_b(B, _tile_cap())
    grid = (pl.cdiv(B, tile_b),)

    batch_map = lambda i: (i, 0)
    const_map = lambda i: (0, 0)

    in_specs = [
        pl.BlockSpec((tile_b, state_dim), batch_map),
        pl.BlockSpec((tile_b, action_dim), batch_map),
        pl.BlockSpec(w1.shape, const_map),      # (d_in, 256) bf16, resident
        pl.BlockSpec(b1.shape, const_map),      # (1, 256) f32
        pl.BlockSpec(w2.shape, const_map),      # (256, 256) bf16, resident
        pl.BlockSpec(b2.shape, const_map),      # (1, 256) f32
        pl.BlockSpec(w3_row.shape, const_map),  # (1, 256) f32 lane-reduce row
        pl.BlockSpec((1,), lambda i: (0,), memory_space=pltpu.MemorySpace.SMEM),
    ]
    # Lane-dense output: (1, B) row, block (1, tile_b); reshaped to (B, 1) below.
    out_specs = pl.BlockSpec((1, tile_b), lambda i: (0, i))

    flops = 2 * B * (d_in * HIDDEN + HIDDEN * HIDDEN + HIDDEN)
    bytes_accessed = (
        (state.size + action.size + B) * 4
        + (w1.size + w2.size) * 2
        + (b1.size + b2.size + w3_row.size + b3.size) * 4
    )

    q_row = pl.pallas_call(
        critic_kernel,
        out_shape=jax.ShapeDtypeStruct((1, B), jnp.float32),
        grid=grid,
        in_specs=in_specs,
        out_specs=out_specs,
        compiler_params=pltpu.CompilerParams(
            dimension_semantics=("parallel",)),
        cost_estimate=pl.CostEstimate(
            flops=flops, transcendentals=0, bytes_accessed=bytes_accessed),
    )(state, action, w1, b1, w2, b2, w3_row, b3)
    return q_row.reshape(B, 1)


def init_params(key, state_dim, action_dim):
    """nn.Linear-style uniform(-1/sqrt(fan_in), +) init.

    Returns (kernel_params, ref_params):
      kernel_params: layout consumed by the Pallas kernel (fused bf16 W1/W2,
                     f32 biases, w3 as a (1,256) row, b3 scalar in SMEM).
      ref_params:    plain f32 (in_features, out_features) layout for the
                     pure-JAX reference.
    """
    d_in = state_dim + action_dim

    def linear(k, fi, fo):
        kw, kb = jax.random.split(k)
        bound = 1.0 / jnp.sqrt(float(fi))
        w = jax.random.uniform(kw, (fi, fo), jnp.float32, -bound, bound)
        b = jax.random.uniform(kb, (1, fo), jnp.float32, -bound, bound)
        return w, b

    k1, k2, k3 = jax.random.split(key, 3)
    w1, b1 = linear(k1, d_in, HIDDEN)
    w2, b2 = linear(k2, HIDDEN, HIDDEN)
    w3, b3 = linear(k3, HIDDEN, 1)

    kernel_params = (
        w1.astype(jnp.bfloat16),     # (d_in, 256) bf16 (fused state+action)
        b1,                          # (1, 256) f32
        w2.astype(jnp.bfloat16),     # (256, 256) bf16
        b2,                          # (1, 256) f32
        w3.T,                        # (1, 256) f32 row for lane reduce
        b3.reshape((1,)),            # (1,) f32 scalar in SMEM
    )
    ref_params = (w1, b1, w2, b2, w3, b3)
    return kernel_params, ref_params


def critic_ref(state, action, ref_params):
    """Pure-JAX f32 reference matching the PyTorch module semantics."""
    w1, b1, w2, b2, w3, b3 = ref_params
    x = jnp.concatenate([state, action], axis=-1)
    h1 = jnp.maximum(x @ w1 + b1, 0.0)
    h2 = jnp.maximum(h1 @ w2 + b2, 0.0)
    return h2 @ w3 + b3


if __name__ == "__main__":
    key = jax.random.PRNGKey(0)
    k_state, k_action, k_params = jax.random.split(key, 3)

    state_dim = 8
    action_dim = 8
    kernel_params, ref_params = init_params(k_params, state_dim, action_dim)

    # Test 1: tiny batch (single full-array block, no tiling).
    # Test 2: batch not a multiple of the tile (exercises multi-step grid and
    #         masked writeback of the partial last tile).
    for batch in (2, 513):
        ks, ka = jax.random.fold_in(k_state, batch), jax.random.fold_in(k_action, batch)
        state = jax.random.normal(ks, (batch, state_dim), jnp.float32)
        action = jax.random.normal(ka, (batch, action_dim), jnp.float32)

        q = critic_forward(state, action, kernel_params)
        q = jax.block_until_ready(q)
        q_ref = critic_ref(state, action, ref_params)

        assert q.shape == (batch, 1), q.shape
        # bf16 weights/activations on the MXU vs f32 reference -> loose tolerance.
        assert jnp.allclose(q, q_ref, atol=5e-2, rtol=5e-2), (
            batch, float(jnp.max(jnp.abs(q - q_ref))))

    print("KERNEL_OK")
</pallas_src>

<mosaic_0001>
module attributes {stable_mosaic.version = 11 : i64} {
  func.func @critic_kernel(%arg0: i32, %arg1: memref<2x8xf32, #tpu.memory_space<vmem>>, %arg2: memref<2x8xf32, #tpu.memory_space<vmem>>, %arg3: memref<16x256xbf16, #tpu.memory_space<vmem>>, %arg4: memref<1x256xf32, #tpu.memory_space<vmem>>, %arg5: memref<256x256xbf16, #tpu.memory_space<vmem>>, %arg6: memref<1x256xf32, #tpu.memory_space<vmem>>, %arg7: memref<1x256xf32, #tpu.memory_space<vmem>>, %arg8: memref<1xf32, #tpu.memory_space<smem>>, %arg9: memref<1x2xf32, #tpu.memory_space<vmem>>) attributes {dimension_semantics = [#tpu.dimension_semantics<parallel>], iteration_bounds = array<i64: 1>, scalar_prefetch = 0 : i64, scratch_operands = 0 : i64, tpu.core_type = #tpu.core_type<tc>, window_params = [{transform_indices = @transform_0, window_bounds = array<i64: 2, 8>}, {transform_indices = @transform_1, window_bounds = array<i64: 2, 8>}, {pipeline_mode = #tpu.pipeline_mode<synchronous>, transform_indices = @transform_2, window_bounds = array<i64: 16, 256>}, {pipeline_mode = #tpu.pipeline_mode<synchronous>, transform_indices = @transform_3, window_bounds = array<i64: 1, 256>}, {pipeline_mode = #tpu.pipeline_mode<synchronous>, transform_indices = @transform_4, window_bounds = array<i64: 256, 256>}, {pipeline_mode = #tpu.pipeline_mode<synchronous>, transform_indices = @transform_5, window_bounds = array<i64: 1, 256>}, {pipeline_mode = #tpu.pipeline_mode<synchronous>, transform_indices = @transform_6, window_bounds = array<i64: 1, 256>}, {transform_indices = @transform_7, window_bounds = array<i64: 1>}, {transform_indices = @transform_8, window_bounds = array<i64: 1, 2>}]} {
    %c0 = arith.constant 0 : index
    %c0_0 = arith.constant 0 : index
    %0 = vector.load %arg1[%c0, %c0_0] : memref<2x8xf32, #tpu.memory_space<vmem>>, vector<2x8xf32>
    %c0_1 = arith.constant 0 : index
    %c0_2 = arith.constant 0 : index
    %1 = vector.load %arg2[%c0_1, %c0_2] : memref<2x8xf32, #tpu.memory_space<vmem>>, vector<2x8xf32>
    %2 = tpu.concatenate %0, %1 in 1 : vector<2x8xf32>, vector<2x8xf32> -> vector<2x16xf32>
    %3 = arith.truncf %2 : vector<2x16xf32> to vector<2x16xbf16>
    %c0_3 = arith.constant 0 : index
    %c0_4 = arith.constant 0 : index
    %4 = vector.load %arg3[%c0_3, %c0_4] : memref<16x256xbf16, #tpu.memory_space<vmem>>, vector<16x256xbf16>
    %cst = arith.constant dense<0.000000e+00> : vector<2x256xf32>
    %5 = tpu.matmul %3, %4, %cst {dimension_numbers = #tpu.dot_dimension_numbers<[1], [0], [0], [1], [0, 0, 1, 1], [], []>} : vector<2x16xbf16>, vector<16x256xbf16>, vector<2x256xf32> -> vector<2x256xf32>
    %c0_5 = arith.constant 0 : index
    %c0_6 = arith.constant 0 : index
    %6 = vector.load %arg4[%c0_5, %c0_6] : memref<1x256xf32, #tpu.memory_space<vmem>>, vector<1x256xf32>
    %7 = vector.broadcast %6 : vector<1x256xf32> to vector<2x256xf32>
    %8 = arith.addf %5, %7 : vector<2x256xf32>
    %cst_7 = arith.constant 0.000000e+00 : f32
    %9 = vector.broadcast %cst_7 : f32 to vector<2x256xf32>
    %10 = arith.maximumf %8, %9 : vector<2x256xf32>
    %11 = arith.truncf %10 : vector<2x256xf32> to vector<2x256xbf16>
    %c0_8 = arith.constant 0 : index
    %c0_9 = arith.constant 0 : index
    %12 = vector.load %arg5[%c0_8, %c0_9] : memref<256x256xbf16, #tpu.memory_space<vmem>>, vector<256x256xbf16>
    %cst_10 = arith.constant dense<0.000000e+00> : vector<2x256xf32>
    %13 = tpu.matmul %11, %12, %cst_10 {dimension_numbers = #tpu.dot_dimension_numbers<[1], [0], [0], [1], [0, 0, 1, 1], [], []>} : vector<2x256xbf16>, vector<256x256xbf16>, vector<2x256xf32> -> vector<2x256xf32>
    %c0_11 = arith.constant 0 : index
    %c0_12 = arith.constant 0 : index
    %14 = vector.load %arg6[%c0_11, %c0_12] : memref<1x256xf32, #tpu.memory_space<vmem>>, vector<1x256xf32>
    %15 = vector.broadcast %14 : vector<1x256xf32> to vector<2x256xf32>
    %16 = arith.addf %13, %15 : vector<2x256xf32>
    %cst_13 = arith.constant 0.000000e+00 : f32
    %17 = vector.broadcast %cst_13 : f32 to vector<2x256xf32>
    %18 = arith.maximumf %16, %17 : vector<2x256xf32>
    %c0_14 = arith.constant 0 : index
    %c0_15 = arith.constant 0 : index
    %19 = vector.load %arg7[%c0_14, %c0_15] : memref<1x256xf32, #tpu.memory_space<vmem>>, vector<1x256xf32>
    %20 = vector.broadcast %19 : vector<1x256xf32> to vector<2x256xf32>
    %21 = arith.mulf %18, %20 : vector<2x256xf32>
    %cst_16 = arith.constant dense<0.000000e+00> : vector<2xf32>
    %22 = vector.multi_reduction <add>, %21, %cst_16 [1] : vector<2x256xf32> to vector<2xf32>
    %c0_17 = arith.constant 0 : index
    %23 = memref.load %arg8[%c0_17] : memref<1xf32, #tpu.memory_space<smem>>
    %24 = vector.broadcast %23 : f32 to vector<2xf32>
    %25 = arith.addf %22, %24 : vector<2xf32>
    %c0_18 = arith.constant 0 : index
    %c0_19 = arith.constant 0 : index
    %26 = vector.load %arg9[%c0_18, %c0_19] : memref<1x2xf32, #tpu.memory_space<vmem>>, vector<1x2xf32>
    %27 = vector.shape_cast %26 : vector<1x2xf32> to vector<2xf32>
    %28 = vector.shape_cast %25 : vector<2xf32> to vector<1x2xf32>
    tpu.vector_store %arg9[%c0_18, %c0_19], %28 {strides = array<i32>} : memref<1x2xf32, #tpu.memory_space<vmem>>, vector<1x2xf32>,
    return
  }
  func.func @transform_0(%arg0: i32) -> (i32, i32) {
    %c0_i32 = arith.constant 0 : i32
    %c0_i32_0 = arith.constant 0 : i32
    return %arg0, %c0_i32 : i32, i32
  }
  func.func @transform_1(%arg0: i32) -> (i32, i32) {
    %c0_i32 = arith.constant 0 : i32
    %c0_i32_0 = arith.constant 0 : i32
    return %arg0, %c0_i32 : i32, i32
  }
  func.func @transform_2(%arg0: i32) -> (i32, i32) {
    %c0_i32 = arith.constant 0 : i32
    %c0_i32_0 = arith.constant 0 : i32
    %c0_i32_1 = arith.constant 0 : i32
    return %c0_i32, %c0_i32_0 : i32, i32
  }
  func.func @transform_3(%arg0: i32) -> (i32, i32) {
    %c0_i32 = arith.constant 0 : i32
    %c0_i32_0 = arith.constant 0 : i32
    %c0_i32_1 = arith.constant 0 : i32
    return %c0_i32, %c0_i32_0 : i32, i32
  }
  func.func @transform_4(%arg0: i32) -> (i32, i32) {
    %c0_i32 = arith.constant 0 : i32
    %c0_i32_0 = arith.constant 0 : i32
    %c0_i32_1 = arith.constant 0 : i32
    return %c0_i32, %c0_i32_0 : i32, i32
  }
  func.func @transform_5(%arg0: i32) -> (i32, i32) {
    %c0_i32 = arith.constant 0 : i32
    %c0_i32_0 = arith.constant 0 : i32
    %c0_i32_1 = arith.constant 0 : i32
    return %c0_i32, %c0_i32_0 : i32, i32
  }
  func.func @transform_6(%arg0: i32) -> (i32, i32) {
    %c0_i32 = arith.constant 0 : i32
    %c0_i32_0 = arith.constant 0 : i32
    %c0_i32_1 = arith.constant 0 : i32
    return %c0_i32, %c0_i32_0 : i32, i32
  }
  func.func @transform_7(%arg0: i32) -> i32 {
    %c0_i32 = arith.constant 0 : i32
    %c0_i32_0 = arith.constant 0 : i32
    return %c0_i32 : i32
  }
  func.func @transform_8(%arg0: i32) -> (i32, i32) {
    %c0_i32 = arith.constant 0 : i32
    %c0_i32_0 = arith.constant 0 : i32
    return %c0_i32, %arg0 : i32, i32
  }
}

</mosaic_0001>

<bundles_post_ra>
// kernel: tpu_custom_call.1
= control target key start
LH: loop header
LB: loop body
LE: loop exit
PB: predicated region body
PF: predicated region fallthrough
CT: control target
= control target key end

     0   :  { %14 = vsyncpa [#allocation4], 0  ;;  %s707_s0 = inlined_call_operand.vmem [shape: f32[2,8], index: 0, kind: input, shape index: {}]   ;;  %s708_s1 = inlined_call_operand.vmem [shape: f32[2,8], index: 1, kind: input, shape index: {}]   ;;  %s709_s2 = inlined_call_operand.hbm [shape: bf16[16,256], index: 2, kind: input, shape index: {}]   ;;  %s710_s3 = inlined_call_operand.vmem [shape: f32[1,256], index: 3, kind: input, shape index: {}]   ;;  %s711_s4 = inlined_call_operand.hbm [shape: bf16[256,256], index: 4, kind: input, shape index: {}]   ;;  %s712_s5 = inlined_call_operand.vmem [shape: f32[1,256], index: 5, kind: input, shape index: {}]   ;;  %s713_s6 = inlined_call_operand.vmem [shape: f32[1,256], index: 6, kind: input, shape index: {}]   ;;  %s714_s7 = inlined_call_operand.<no memory space> [shape: f32[1], index: 7, kind: input, shape index: {}]   ;;  %s715_s8 = inlined_call_operand.hbm [shape: f32[1,2], index: 8, kind: output, shape index: {}]  }
   0x1   :  { %15 = vsyncpa [#allocation7], 0 }
   0x2   :  { %16 = vsyncpa [#allocation5], 0  ;;  %s602_s27 = smov [#allocation3]   ;;  %s530_s9 = scalar_lea.hbm %s709_s2, 256 }
   0x3   :  { %s26_s28 = sshll.u32 %s602_s27, 4  ;;  %p531_p0 = scmp.ne.s32.totalorder %s709_s2, %s530_s9  ;;  %s27_s28 = int_to_ptr.vmem [resolvable:$true] %s26_s28 }
   0x4   :  { %p534_p1 = scmp.lt.u32.totalorder %s530_s9, %s709_s2 }
   0x6   :  { %p536_p2 = pnand %p534_p1, %p531_p0 }
   0x8   :  { %539 = shalt.err (!%p536_p2)
}
   0x9   :  { %s540_s14 = scalar_lea.vmem %s27_s28, 256  ;;  %p545_p4 = scmp.lt.s32.totalorder %s27_s28, %s27_s28 }
   0xa   :  { %p541_p3 = scmp.ne.s32.totalorder %s27_s28, %s540_s14  ;;  %p546_p5 = scmp.lt.s32.totalorder %s540_s14, %s540_s14 }
   0xc   :  { %p547_p6 = por %p546_p5, %p545_p4 }
   0xe   :  { %p548_p7 = pnand %p547_p6, %p541_p3 }
  0x10   :  { %551 = shalt.err (!%p548_p7)
}
  0x11   :  { %s603_s15 = smov 128   ;;  %s604_s16 = smov 8  }
  0x12   :  { %32 = dma.hbm_to_vmem [thread:$0]  %s709_s2, 256, %s27_s28, [#allocation4], %s603_s15, %s603_s15, %s604_s16  }
  0x13   :  { %s605_s19 = smov [#allocation6]   ;;  %s552_s23 = scalar_lea.hbm %s711_s4, 4096 }
  0x14   :  { %s40_s20 = sshll.u32 %s605_s19, 4  ;;  %p553_p8 = scmp.ne.s32.totalorder %s711_s4, %s552_s23  ;;  %s41_s20 = int_to_ptr.vmem [resolvable:$true] %s40_s20 }
  0x15   :  { %p556_p9 = scmp.lt.u32.totalorder %s552_s23, %s711_s4 }
  0x17   :  { %p558_p10 = pnand %p556_p9, %p553_p8 }
  0x19   :  { %561 = shalt.err (!%p558_p10)
}
  0x1a   :  { %s562_s29 = scalar_lea.vmem %s41_s20, 4096  ;;  %p567_p12 = scmp.lt.s32.totalorder %s41_s20, %s41_s20 }
  0x1b   :  { %p563_p11 = scmp.ne.s32.totalorder %s41_s20, %s562_s29  ;;  %p568_p13 = scmp.lt.s32.totalorder %s562_s29, %s562_s29 }
  0x1d   :  { %p569_p0 = por %p568_p13, %p567_p12 }
  0x1f   :  { %p570_p1 = pnand %p569_p0, %p563_p11 }
  0x21   :  { %573 = shalt.err (!%p570_p1)
}
  0x22   :  { %46 = dma.hbm_to_vmem [thread:$0]  %s711_s4, 4096, %s41_s20, [#allocation7], %s603_s15, %s603_s15, %s604_s16  }
  0x23   :  { %596 = dma.done.wait [#allocation4], 256  }
  0x24   :  { %597 = vsyncadd [#allocation4], 4294967040 }
  0x25   :  { %598 = dma.done.wait [#allocation7], 4096  }
  0x26   :  { %599 = vsyncadd [#allocation7], 4294963200  ;;  %v606_v0 = vmov 0   ;;  %v61_v1 = vld [vmem:[%s708_s1] sm:$0x3]  ;;  %vm66_vm0 = vcmask 64512   ;;  %v73_v40 = vlaneseq }
  0x27   :  { %129 = vmatprep.mubr.bf16.mxu0 %v606_v0  ;;  %63 = vrot.lane.b32.xlu0 %v61_v1, %s604_s16  ;;  %v479_v2 = vld [vmem:[#allocation3 + $0x4] ss:$8 sps:$4 sm:$0xff]   ;;  %v481_v3 = vld [vmem:[#allocation3] ss:$8 sps:$4 sm:$0xff]   ;;  %v482_v4 = vld [vmem:[#allocation6 + $0x4] ss:$8 sps:$4 sm:$0xff]  }
  0x28   :  { %97 = vmatprep.subr.bf16.mxu0 %v479_v2  ;;  %v484_v5 = vld [vmem:[#allocation6] ss:$8 sps:$4 sm:$0xff]   ;;  %346 = vmatprep.subr.bf16.mxu1 %v482_v4  ;;  %v485_v6 = vld [vmem:[#allocation6 + $0x14] ss:$8 sps:$4 sm:$0xff]   ;;  %v487_v7 = vld [vmem:[#allocation6 + $0x10] ss:$8 sps:$4 sm:$0xff]  }
  0x29   :  { %98 = vmatpush1.bf16.msra.mxu0 %v481_v3  ;;  %347 = vmatpush1.bf16.msra.mxu1 %v484_v5  ;;  %v488_v8 = vld [vmem:[#allocation6 + $0x24] ss:$8 sps:$4 sm:$0xff]   ;;  %v490_v9 = vld [vmem:[#allocation6 + $0x20] ss:$8 sps:$4 sm:$0xff]   ;;  %v491_v10 = vld [vmem:[#allocation6 + $0x34] ss:$8 sps:$4 sm:$0xff]  }
  0x2a   :  { %348 = vmatprep.subr.bf16.mxu1 %v485_v6  ;;  %v493_v11 = vld [vmem:[#allocation6 + $0x30] ss:$8 sps:$4 sm:$0xff]   ;;  %v494_v12 = vld [vmem:[#allocation6 + $0x44] ss:$8 sps:$4 sm:$0xff]   ;;  %v496_v13 = vld [vmem:[#allocation6 + $0x40] ss:$8 sps:$4 sm:$0xff]  }
  0x2b   :  { %v497_v14 = vld [vmem:[#allocation6 + $0x54] ss:$8 sps:$4 sm:$0xff]   ;;  %v499_v15 = vld [vmem:[#allocation6 + $0x50] ss:$8 sps:$4 sm:$0xff]   ;;  %v500_v16 = vld [vmem:[#allocation6 + $0x64] ss:$8 sps:$4 sm:$0xff]  }
  0x2c   :  { %v502_v17 = vld [vmem:[#allocation6 + $0x60] ss:$8 sps:$4 sm:$0xff]   ;;  %v503_v18 = vld [vmem:[#allocation6 + $0x74] ss:$8 sps:$4 sm:$0xff]   ;;  %v505_v19 = vld [vmem:[#allocation6 + $0x70] ss:$8 sps:$4 sm:$0xff]  }
  0x2d   :  { %349 = vmatpush1.bf16.msra.mxu1 %v487_v7  ;;  %v506_v20 = vld [vmem:[#allocation6 + $0x84] ss:$8 sps:$4 sm:$0xff]   ;;  %v508_v21 = vld [vmem:[#allocation6 + $0x80] ss:$8 sps:$4 sm:$0xff]   ;;  %v509_v22 = vld [vmem:[#allocation6 + $0x94] ss:$8 sps:$4 sm:$0xff]  }
  0x2e   :  { %350 = vmatprep.subr.bf16.mxu1 %v488_v8  ;;  %v511_v23 = vld [vmem:[#allocation6 + $0x90] ss:$8 sps:$4 sm:$0xff]   ;;  %v512_v24 = vld [vmem:[#allocation6 + $0xa4] ss:$8 sps:$4 sm:$0xff]   ;;  %v514_v25 = vld [vmem:[#allocation6 + $0xa0] ss:$8 sps:$4 sm:$0xff]  }
  0x2f   :  { %v515_v26 = vld [vmem:[#allocation6 + $0xb4] ss:$8 sps:$4 sm:$0xff]   ;;  %v517_v27 = vld [vmem:[#allocation6 + $0xb0] ss:$8 sps:$4 sm:$0xff]   ;;  %v518_v28 = vld [vmem:[#allocation6 + $0xc4] ss:$8 sps:$4 sm:$0xff]  }
  0x30   :  { %v520_v29 = vld [vmem:[#allocation6 + $0xc0] ss:$8 sps:$4 sm:$0xff]   ;;  %v521_v30 = vld [vmem:[#allocation6 + $0xd4] ss:$8 sps:$4 sm:$0xff]   ;;  %v523_v31 = vld [vmem:[#allocation6 + $0xd0] ss:$8 sps:$4 sm:$0xff]  }
  0x31   :  { %351 = vmatpush1.bf16.msra.mxu1 %v490_v9  ;;  %v60_v32 = vld [vmem:[%s707_s0] sm:$0x3]  ;;  %vm93_vm1 = vcmask 130048   ;;  %v524_v36 = vld [vmem:[#allocation6 + $0xe4] ss:$8 sps:$4 sm:$0xff]   ;;  %v74_v41 = vshrl.u32 %v73_v40, 7 }
  0x32   :  { %352 = vmatprep.subr.bf16.mxu1 %v491_v10  ;;  %v526_v37 = vld [vmem:[#allocation6 + $0xe0] ss:$8 sps:$4 sm:$0xff]   ;;  %v527_v38 = vld [vmem:[#allocation6 + $0xf4] ss:$8 sps:$4 sm:$0xff]   ;;  %v529_v39 = vld [vmem:[#allocation6 + $0xf0] ss:$8 sps:$4 sm:$0xff]  }
  0x33   :  { %v75_v42 = vsub.s32 0, %v74_v41  ;;  %v71_v43 = vld [vmem:[%s710_s3] sm:$0x3]  ;;  %v79_v44 = vsub.s32 1, %v74_v41  ;;  %vm403_vm2 = vcmask 1041408   ;;  %s607_s14 = smov [#allocation8]  }
  0x34   :  { %v174_v57 = vld [vmem:[%s712_s5] sm:$0x3]  ;;  %s428_s15 = sshll.u32 %s607_s14, 4  ;;  %vm420_vm3 = vcmask 8192   ;;  %s429_s15 = int_to_ptr.vmem [resolvable:$true] %s428_s15 }
  0x35   :  { %353 = vmatpush1.bf16.msra.mxu1 %v493_v11  ;;  %v76_v45 = vrot.slane %v71_v43, %v75_v42  ;;  %v80_v46 = vrot.slane %v71_v43, %v79_v44  ;;  %v179_v58 = vrot.slane %v174_v57, %v75_v42  ;;  %v389_v59 = vld [vmem:[%s713_s6] sm:$0x3]  ;;  %v183_v60 = vrot.slane %v174_v57, %v79_v44  ;;  %s574_s16 = scalar_lea.vmem %s429_s15, 16  ;;  %s578_s17 = scalar_lea.vmem %s429_s15, 32 }
  0x36   :  { %354 = vmatprep.subr.bf16.mxu1 %v494_v12  ;;  %v394_v63 = vrot.slane %v389_v59, %v75_v42  ;;  %v398_v2 = vrot.slane %v389_v59, %v79_v44  ;;  %v414_v12 = vand.u32 127, %v73_v40  ;;  %p575_p2 = scmp.ne.s32.totalorder %s429_s15, %s574_s16  ;;  %p579_p3 = scmp.lt.s32.totalorder %s429_s15, %s429_s15 }
  0x37   :  { %p580_p4 = scmp.lt.s32.totalorder %s578_s17, %s574_s16 }
  0x39   :  { %355 = vmatpush1.bf16.msra.mxu1 %v496_v13  ;;  %v410_v13 = vstv %s714_s7  ;;  %p581_p5 = por %p580_p4, %p579_p3 }
  0x3a   :  { %356 = vmatprep.subr.bf16.mxu1 %v497_v14  ;;  %v417_v14 = vsub.s32 %v414_v12, %v74_v41 }
  0x3b   :  { %p582_p6 = pnand %p581_p5, %p575_p2 }
  0x3d   :  { %357 = vmatpush1.bf16.msra.mxu1 %v499_v15 }
  0x3e   :  { %358 = vmatprep.subr.bf16.mxu1 %v500_v16 }
  0x41   :  { %359 = vmatpush1.bf16.msra.mxu1 %v502_v17 }
  0x42   :  { %360 = vmatprep.subr.bf16.mxu1 %v503_v18 }
  0x45   :  { %361 = vmatpush1.bf16.msra.mxu1 %v505_v19 }
  0x46   :  { %362 = vmatprep.subr.bf16.mxu1 %v506_v20 }
  0x49   :  { %363 = vmatpush1.bf16.msra.mxu1 %v508_v21 }
  0x4a   :  { %364 = vmatprep.subr.bf16.mxu1 %v509_v22 }
  0x4d   :  { %365 = vmatpush1.bf16.msra.mxu1 %v511_v23 }
  0x4e   :  { %366 = vmatprep.subr.bf16.mxu1 %v512_v24 }
  0x51   :  { %367 = vmatpush1.bf16.msra.mxu1 %v514_v25 }
  0x52   :  { %368 = vmatprep.subr.bf16.mxu1 %v515_v26 }
  0x55   :  { %369 = vmatpush1.bf16.msra.mxu1 %v517_v27 }
  0x56   :  { %370 = vmatprep.subr.bf16.mxu1 %v518_v28 }
  0x59   :  { %371 = vmatpush1.bf16.msra.mxu1 %v520_v29 }
  0x5a   :  { %372 = vmatprep.subr.bf16.mxu1 %v521_v30 }
  0x5d   :  { %373 = vmatpush1.bf16.msra.mxu1 %v523_v31 }
  0x5e   :  { %374 = vmatprep.subr.bf16.mxu1 %v524_v36 }
  0x61   :  { %375 = vmatpush1.bf16.msra.mxu1 %v526_v37 }
  0x62   :  { %376 = vmatprep.subr.bf16.mxu1 %v527_v38 }
  0x65   :  { %377 = vmatpush1.bf16.msra.mxu1 %v529_v39 }
  0x99   :  { %v64_v33 = vpop.permute.xlu0 %63 }
  0x9a   :  { %v67_v34 = vsel %vm66_vm0, %v60_v32, %v64_v33 }
  0x9b   :  { %v68_v35 = vpack.c.bf16 %v67_v34, %v67_v34 }
  0x9d   :  { %440 = vmatmul.mubr.msk.bf16.vlgmr.msra.gmra.mrb[0].mxu0 %vm93_vm1, %v68_v35 }
 0x170   :  { %v131_v47 = vpop.f32.mrb[0].mxu0 }
 0x171   :  { %v132_v48 = vadd.f32 %v131_v47, %v76_v45  ;;  %v133_v49 = vpop.f32.mrb[1].mxu0 }
 0x172   :  { %v134_v50 = vadd.f32 %v133_v49, %v80_v46  ;;  %v135_v51 = vpop.f32.mrb[2].mxu0 }
 0x173   :  { %v138_v52 = vmax.f32 %v132_v48, 0.0  ;;  %v136_v53 = vpop.f32.mrb[3].mxu0 }
 0x174   :  { %v139_v54 = vmax.f32 %v134_v50, 0.0 }
 0x175   :  { %v140_v56 = vpack.c.bf16 %v138_v52, %v138_v52 }
 0x176   :  { %v141_v55 = vpack.c.bf16 %v139_v54, %v139_v54 }
 0x178   :  { %378 = vmatprep.mubr.bf16.mxu1 %v141_v55 }
 0x179   :  { %379 = vmatmul.mubr.bf16.vlgmr.msra.gmra.mrb[0].mxu1 %v140_v56 }
 0x24c   :  { %v380_v61 = vpop.f32.mrb[0].mxu1 }
 0x24d   :  { %v381_v62 = vadd.f32 %v380_v61, %v179_v58  ;;  %v382_v0 = vpop.f32.mrb[1].mxu1 }
 0x24e   :  { %v383_v1 = vadd.f32 %v382_v0, %v183_v60  ;;  %v384_v3 = vpop.f32.mrb[2].mxu1 }
 0x24f   :  { %v387_v4 = vmax.f32 %v381_v62, 0.0  ;;  %v385_v5 = vpop.f32.mrb[3].mxu1 }
 0x250   :  { %v388_v6 = vmax.f32 %v383_v1, 0.0 }
 0x251   :  { %v401_v7 = vmul.f32 %v394_v63, %v387_v4 }
 0x252   :  { %v402_v8 = vmul.f32 %v398_v2, %v388_v6 }
 0x253   :  { %v404_v9 = vsel %vm403_vm2, %v401_v7, 0.0 }
 0x254   :  { %v405_v10 = vsel %vm403_vm2, %v402_v8, 0.0 }
 0x255   :  { %v406_v11 = vadd.f32 %v405_v10, %v404_v9 }
 0x257   :  { %407 = vadd.xlane.f32.xlu0 %v406_v11 }
 0x2e4   :  { %v408_v15 = vpop.xlane.xlu0 %407 }
 0x2e5   :  { %v411_v16 = vadd.f32 %v410_v13, %v408_v15 }
 0x2e7   :  { %v418_v17 = vrot.slane %v411_v16, %v417_v14 }
 0x2e9   :  { %421 = vst.msk [vmem:[#allocation8] sm:$0x1] %vm420_vm3, %v418_v17 }
 0x2ea   :  { %585 = shalt.err (!%p582_p6)
}
 0x2eb   :  { %s586_s7 = scalar_lea.hbm %s715_s8, 16 }
 0x2ec   :  { %p587_p7 = scmp.ne.s32.totalorder %s715_s8, %s586_s7  ;;  %p590_p8 = scmp.lt.u32.totalorder %s586_s7, %s715_s8 }
 0x2ee   :  { %p592_p9 = pnand %p590_p8, %p587_p7 }
 0x2f0   :  { %595 = shalt.err (!%p592_p9)
}
 0x2f1   :  { %431 = dma.vmem_to_hbm [thread:$0]  %s429_s15, 16, %s715_s8, [#allocation5]  }
 0x2f2   :  { %600 = dma.done.wait [#allocation5], 16  }
 0x2f3   :  { %601 = vsyncadd [#allocation5], 4294967280 }
 0x2f4   :  { %435 = vsyncpa [#allocation4], 1 }
 0x2f5   :  { %436 = vsyncpa [#allocation7], 1 }
 0x2f6   :  { %437 = vsyncpa [#allocation5], 1 }

</bundles_post_ra>
